<compile_context>
chip_gen: v6e
topology: v6e:2x2x1
jax: 0.10.0
libtpu: 0.0.40
codegen_flags: <defaults>
</compile_context>

<pallas_src>
import numpy as np
import jax
import jax.numpy as jnp
from jax.experimental import pallas as pl
from jax.experimental.pallas import tpu as pltpu


def _add_pe_kernel(x_ref, pe_ref, o_ref):
    # x_ref block: (1, T, 128); pe_ref block: (T, 128) -> broadcast add over batch.
    o_ref[...] = x_ref[...] + pe_ref[...]


def _pick_tile_rows(n_rows, row_step, cap_rows):
    """Largest multiple of `row_step` that divides n_rows and is <= cap_rows."""
    if n_rows % row_step != 0:
        return n_rows                      # full-extent block is always legal
    t = min(cap_rows, n_rows)
    t -= t % row_step
    while n_rows % t != 0:
        t -= row_step
    return t


def pos_embed_2d_sin0(x, peX, peY):
    """x: (B, L, D); peX, peY: (sqn, D//2). Returns x + interleaved 2-D pos embed."""
    B, L, D = x.shape
    sqn = int(np.sqrt(L))
    assert sqn * sqn == L, "sequence length must be a perfect square"
    assert D % 2 == 0, "d_model must be even for the even/odd interleave"
    assert peX.shape == (sqn, D // 2) and peY.shape == (sqn, D // 2)

    # --- glue: interleaved positional-embedding table pe (L, D), in x's dtype ---
    row_idx = jnp.arange(L, dtype=jnp.int32) // sqn          # position[0, l]
    col_idx = jnp.arange(L, dtype=jnp.int32) % sqn           # position[1, l]
    pe_even = jnp.take(peX, row_idx, axis=0)                  # -> even channels
    pe_odd = jnp.take(peY, col_idx, axis=0)                   # -> odd channels
    pe = jnp.stack([pe_even, pe_odd], axis=-1).reshape(L, D).astype(x.dtype)

    # --- lane-dense layout: flatten (L, D), pad to a multiple of 128 lanes ---
    flat = L * D
    pad = (-flat) % 128
    x_flat = x.reshape(B, flat)
    pe_flat = pe.reshape(flat)
    if pad:
        x_flat = jnp.pad(x_flat, ((0, 0), (0, pad)))
        pe_flat = jnp.pad(pe_flat, ((0, pad),))
    n_rows = (flat + pad) // 128
    x2 = x_flat.reshape(B, n_rows, 128)
    pe2 = pe_flat.reshape(n_rows, 128)

    # Sublane granularity per dtype (f32 -> 8, bf16 -> 16, int8/fp8 -> 32 rows).
    itemsize = jnp.dtype(x.dtype).itemsize
    row_step = 8 * max(1, 4 // itemsize)
    # Cap at 1024x128 rows (512 KiB f32 per block): double-buffered x + out +
    # pe stays ~3 MiB, safe under v5e's 16 MiB / v7x's 32 MiB scoped defaults.
    tile_rows = _pick_tile_rows(n_rows, row_step, cap_rows=1024)

    grid = (B, n_rows // tile_rows)

    out2 = pl.pallas_call(
        _add_pe_kernel,
        out_shape=jax.ShapeDtypeStruct((B, n_rows, 128), x.dtype),
        grid_spec=pl.GridSpec(
            grid=grid,
            in_specs=[
                pl.BlockSpec((1, tile_rows, 128), lambda b, t: (b, t, 0)),
                pl.BlockSpec((tile_rows, 128), lambda b, t: (t, 0)),
            ],
            out_specs=pl.BlockSpec((1, tile_rows, 128), lambda b, t: (b, t, 0)),
        ),
        compiler_params=pltpu.CompilerParams(
            dimension_semantics=("parallel", "parallel"),
            vmem_limit_bytes=32 * 1024 * 1024,
        ),
        input_output_aliases={0: 0},   # donate x -> out (matches in-place PyTorch forward)
    )(x2, pe2)

    out_flat = out2.reshape(B, n_rows * 128)
    if pad:
        out_flat = out_flat[:, :flat]
    return out_flat.reshape(B, L, D)


if __name__ == "__main__":
    d_model = 32
    max_len = 64            # sqn = 8
    B = 2
    sqn = int(np.sqrt(max_len))
    L = sqn * sqn

    key = jax.random.PRNGKey(0)
    k_x, k_px, k_py = jax.random.split(key, 3)

    # Deterministic "parameters" (stand-in for torch.randn Parameters).
    peX = jax.random.normal(k_px, (sqn, d_model // 2), dtype=jnp.float32)
    peY = jax.random.normal(k_py, (sqn, d_model // 2), dtype=jnp.float32)
    x = jax.random.normal(k_x, (B, L, d_model), dtype=jnp.float32)

    fn = jax.jit(pos_embed_2d_sin0)
    out = fn(x, peX, peY)
    out = jax.block_until_ready(out)

    # Pure-JAX/NumPy reference check (same semantics as the PyTorch forward).
    row_idx = np.arange(L) // sqn
    col_idx = np.arange(L) % sqn
    ref = np.array(x)
    ref[:, :, 0::2] = ref[:, :, 0::2] + np.array(peX)[row_idx, :][None]
    ref[:, :, 1::2] = ref[:, :, 1::2] + np.array(peY)[col_idx, :][None]
    np.testing.assert_allclose(np.array(out), ref, rtol=1e-6, atol=1e-6)

    print("KERNEL_OK")
</pallas_src>

<mosaic_0001>
module attributes {stable_mosaic.version = 11 : i64} {
  func.func @_add_pe_kernel(%arg0: i32, %arg1: i32, %arg2: memref<1x16x128xf32, #tpu.memory_space<vmem>>, %arg3: memref<16x128xf32, #tpu.memory_space<vmem>>, %arg4: memref<1x16x128xf32, #tpu.memory_space<vmem>>) attributes {dimension_semantics = [#tpu.dimension_semantics<parallel>, #tpu.dimension_semantics<parallel>], iteration_bounds = array<i64: 2, 1>, scalar_prefetch = 0 : i64, scratch_operands = 0 : i64, tpu.core_type = #tpu.core_type<tc>, window_params = [{transform_indices = @transform_0, window_bounds = array<i64: 1, 16, 128>}, {transform_indices = @transform_1, window_bounds = array<i64: 16, 128>}, {transform_indices = @transform_2, window_bounds = array<i64: 1, 16, 128>}]} {
    %c0 = arith.constant 0 : index
    %c0_0 = arith.constant 0 : index
    %c0_1 = arith.constant 0 : index
    %0 = vector.load %arg2[%c0, %c0_0, %c0_1] : memref<1x16x128xf32, #tpu.memory_space<vmem>>, vector<1x16x128xf32>
    %c0_2 = arith.constant 0 : index
    %c0_3 = arith.constant 0 : index
    %1 = vector.load %arg3[%c0_2, %c0_3] : memref<16x128xf32, #tpu.memory_space<vmem>>, vector<16x128xf32>
    %2 = vector.shape_cast %1 : vector<16x128xf32> to vector<1x16x128xf32>
    %3 = arith.addf %0, %2 : vector<1x16x128xf32>
    %c0_4 = arith.constant 0 : index
    %c0_5 = arith.constant 0 : index
    %c0_6 = arith.constant 0 : index
    %4 = vector.load %arg4[%c0_4, %c0_5, %c0_6] : memref<1x16x128xf32, #tpu.memory_space<vmem>>, vector<1x16x128xf32>
    tpu.vector_store %arg4[%c0_4, %c0_5, %c0_6], %3 {strides = array<i32>} : memref<1x16x128xf32, #tpu.memory_space<vmem>>, vector<1x16x128xf32>,
    return
  }
  func.func @transform_0(%arg0: i32, %arg1: i32) -> (i32, i32, i32) {
    %c0_i32 = arith.constant 0 : i32
    %c0_i32_0 = arith.constant 0 : i32
    return %arg0, %arg1, %c0_i32 : i32, i32, i32
  }
  func.func @transform_1(%arg0: i32, %arg1: i32) -> (i32, i32) {
    %c0_i32 = arith.constant 0 : i32
    %c0_i32_0 = arith.constant 0 : i32
    return %arg1, %c0_i32 : i32, i32
  }
  func.func @transform_2(%arg0: i32, %arg1: i32) -> (i32, i32, i32) {
    %c0_i32 = arith.constant 0 : i32
    %c0_i32_0 = arith.constant 0 : i32
    return %arg0, %arg1, %c0_i32 : i32, i32, i32
  }
}

</mosaic_0001>

<bundles_post_ra>
// kernel: pos_embed_2d_sin0.1
= control target key start
LH: loop header
LB: loop body
LE: loop exit
PB: predicated region body
PF: predicated region fallthrough
CT: control target
= control target key end

     0   :  { %s392_s9 = smov 0   ;;  %s394_s10 = smov 0   ;;  %s419_s0 = inlined_call_operand.vmem [shape: f32[2,16,128], index: 0, kind: input, shape index: {}, may-alias: {0,2}]   ;;  %s420_s1 = inlined_call_operand.vmem [shape: f32[16,128], index: 1, kind: input, shape index: {}]   ;;  %s421_s2 = inlined_call_operand.vmem [shape: f32[2,16,128], index: 2, kind: output, shape index: {}, may-alias: {0,2}]  }
   0x1   :  { %s396_s11 = smov 0  }
   0x2 LB: > { %s24_s12 = sadd.s32 1, %s371_s10  ;;  %p320_p0 = scmp.ge.s32.totalorder %s375_s11, 1  ;;  %s375_s11 = sphi %s396_s11, %s12_s11   ;;  %s371_s10 = sphi %s394_s10, %s423_s10   ;;  %s367_s9 = sphi %s392_s9, %s422_s9  }
   0x3   : > { %p26_p1 = scmp.ge.s32.totalorder %s24_s12, 2  ;;  %p144_p2 = scmp.lt.s32.totalorder %s375_s11, 3 }
   0x5   : > { %s425_s12 = smov (%p26_p1, %s24_s12), 0  ;;  %p145_p3 = pnand %p320_p0, %p144_p2 }
   0x6   : > { %p180_p4 = scmp.lt.s32.totalorder (!%p145_p3), %s367_s9, 1 }
   0x7   : > { %148 = sbr.rel (%p145_p3) target bundleno = 19 (0x13), region = 28 }
   0xc   : > { %s427_s9 = smov (!%p180_p4, %s367_s9), 1  ;;  %v207_v0 = vld [vmem:[%s420_s1] sm:$0xff]  ;;  %v208_v1 = vld [vmem:[%s420_s1 + $0x8] sm:$0xff] }
   0xd   : > { %s327_s13 = sshll.u32 %s427_s9, 4 }
   0xe   : > { %s187_s20 = scalar_lea.vmem %s419_s0, %s327_s13  ;;  %s203_s23 = scalar_lea.vmem %s421_s2, %s327_s13 }
   0xf   : > { %v205_v2 = vld [vmem:[%s187_s20] sm:$0xff]  ;;  %v206_v3 = vld [vmem:[%s187_s20 + $0x8] sm:$0xff] }
  0x10   : > { %v209_v4 = vadd.f32 %v207_v0, %v205_v2  ;;  %v210_v5 = vadd.f32 %v208_v1, %v206_v3 }
  0x12   : > { %211 = vst [vmem:[%s203_s23] sm:$0xff] %v209_v4  ;;  %212 = vst [vmem:[%s203_s23 + $0x8] sm:$0xff] %v210_v5 }
  0x13 PF: > { %s12_s11 = sadd.s32 1, %s375_s11   ;;  %s422_s9 = smov %s371_s10 }
  0x14   : > { %p9_p5 = scmp.ge.s32.totalorder %s12_s11, 4   ;;  %s423_s10 = smov %s425_s12 }
  0x16   :  { %11 = sbr.rel (!%p9_p5) target bundleno = 2 (0x2), region = 61 }

</bundles_post_ra>
